<compile_context>
chip_gen: v5e
topology: v5e:2x2
jax: 0.10.0
libtpu: 0.0.40
codegen_flags: <defaults>
</compile_context>

<pallas_src>
import jax
import jax.numpy as jnp
from jax.experimental import pallas as pl
from jax.experimental.pallas import tpu as pltpu


def _round_up(n, m):
    return -(-n // m) * m


def _make_tv_kernel(tb, tiles_per_split, num_valid, needs_mask):
    """Builds the per-grid-step kernel (closes over static tiling params)."""

    def kernel(x_ref, h_ref, w_ref, acc_h_ref, acc_w_ref):
        # x_ref:     (TB, H, W) VMEM input tile (TB image-channel slices).
        # h_ref:     (1, 1, 1)  per-split partial sum of squared H-diffs.
        # w_ref:     (1, 1, 1)  per-split partial sum of squared W-diffs.
        # acc_h_ref: (H-1, W)   f32 vector-form accumulator.
        # acc_w_ref: (H, W-1)   f32 vector-form accumulator.
        i = pl.program_id(1)                   # reduction axis within a split

        @pl.when(i == 0)
        def _init():
            acc_h_ref[...] = jnp.zeros_like(acc_h_ref)
            acc_w_ref[...] = jnp.zeros_like(acc_w_ref)

        x = x_ref[...].astype(jnp.float32)     # (TB, H, W)

        if needs_mask:
            # Zero out slices past the end of the real data (partial boundary
            # tiles and clamped/duplicated tiles).  Zeroed slices contribute
            # exactly 0 to both squared-difference sums.
            start = (pl.program_id(0) * tiles_per_split + i) * tb
            sl = jax.lax.broadcasted_iota(jnp.int32, (tb, 1, 1), 0)
            x = jnp.where(start + sl < num_valid, x, 0.0)

        dh = x[:, 1:, :] - x[:, :-1, :]        # (TB, H-1, W)  vertical diffs
        dw = x[:, :, 1:] - x[:, :, :-1]        # (TB, H, W-1)  horizontal diffs

        # Stay in vector form in the hot loop: only the TB axis is collapsed
        # (elementwise VPU adds); the cross-lane reduce happens once, below.
        acc_h_ref[...] += jnp.sum(dh * dh, axis=0)
        acc_w_ref[...] += jnp.sum(dw * dw, axis=0)

        @pl.when(i == pl.num_programs(1) - 1)
        def _finalize():
            h_ref[...] = jnp.zeros_like(h_ref) + jnp.sum(acc_h_ref[...])
            w_ref[...] = jnp.zeros_like(w_ref) + jnp.sum(acc_w_ref[...])

    return kernel


def tv_loss(x, tv_loss_weight=1.0, *, num_splits=2,
            target_tile_bytes=2 * 1024 * 1024):
    """Pallas implementation of TVLoss.forward for NCHW input."""
    B, C, H, W = x.shape
    BC = B * C
    xf = x.reshape(BC, H, W)                   # keep native dtype through DMA

    itemsize = xf.dtype.itemsize
    # VMEM footprint of one (H, W) slice, including the (sublane, lane)
    # padding Mosaic applies to the last two dims.
    sublane = 32 // itemsize                   # 8 for f32, 16 for bf16, ...
    padded_slice_bytes = _round_up(H, sublane) * _round_up(W, 128) * itemsize

    # TB = image-channel slices per grid step, from a padded-VMEM budget so
    # that double-buffered input tiles + f32 temporaries fit comfortably in
    # every chip's VMEM (v7x has only 64 MiB per TensorCore).
    tb = max(1, min(pl.cdiv(BC, max(1, num_splits)),
                    target_tile_bytes // max(1, padded_slice_bytes)))

    total_tiles = pl.cdiv(BC, tb)
    num_splits = max(1, min(num_splits, total_tiles))
    tiles_per_split = pl.cdiv(total_tiles, num_splits)

    # No zero-padding copy of the input: boundary tiles that read past BC are
    # masked in-kernel, and block indices past the last real tile are clamped
    # in the index_map (their whole contribution is masked to zero).
    needs_mask = num_splits * tiles_per_split * tb != BC
    if num_splits * tiles_per_split == total_tiles:
        def in_index_map(c, i):
            return (c * tiles_per_split + i, 0, 0)
    else:
        last_tile = total_tiles - 1

        def in_index_map(c, i):
            return (jnp.minimum(c * tiles_per_split + i, last_tile), 0, 0)

    kernel = _make_tv_kernel(tb, tiles_per_split, BC, needs_mask)

    h_tv, w_tv = pl.pallas_call(
        kernel,
        out_shape=(
            jax.ShapeDtypeStruct((num_splits, 1, 1), jnp.float32),
            jax.ShapeDtypeStruct((num_splits, 1, 1), jnp.float32),
        ),
        grid_spec=pltpu.PrefetchScalarGridSpec(
            num_scalar_prefetch=0,
            grid=(num_splits, tiles_per_split),
            in_specs=[pl.BlockSpec((tb, H, W), in_index_map)],
            out_specs=[
                pl.BlockSpec((1, 1, 1), lambda c, i: (c, 0, 0)),
                pl.BlockSpec((1, 1, 1), lambda c, i: (c, 0, 0)),
            ],
            scratch_shapes=[
                pltpu.VMEM((H - 1, W), jnp.float32),
                pltpu.VMEM((H, W - 1), jnp.float32),
            ],
        ),
        compiler_params=pltpu.CompilerParams(
            # axis 0: split across TensorCores on v7x (harmless sequential
            # loop on v5e/v6e); axis 1: the reduction within a split.
            dimension_semantics=("parallel", "arbitrary"),
            vmem_limit_bytes=40 * 1024 * 1024,
        ),
    )(xf)

    h_sum = jnp.sum(h_tv)
    w_sum = jnp.sum(w_tv)
    # NOTE: normalization matches the provided PyTorch module exactly
    # (count_h / count_w do NOT include the channel dimension).
    count_h = (H - 1) * W
    count_w = H * (W - 1)
    return (tv_loss_weight * 2.0
            * (h_sum / count_h + w_sum / count_w) / B)


def tv_loss_ref(x, tv_loss_weight=1.0):
    """Pure-JAX reference matching the PyTorch module."""
    B, C, H, W = x.shape
    count_h = (H - 1) * W
    count_w = H * (W - 1)
    h_tv = jnp.sum(jnp.square(x[:, :, 1:, :] - x[:, :, :H - 1, :]))
    w_tv = jnp.sum(jnp.square(x[:, :, :, 1:] - x[:, :, :, :W - 1]))
    return tv_loss_weight * 2.0 * (h_tv / count_h + w_tv / count_w) / B


if __name__ == "__main__":
    key = jax.random.PRNGKey(0)

    # 1) NCHW input, tiling divides exactly (no masking path).
    x = jax.random.normal(key, (2, 4, 16, 16), dtype=jnp.float32)
    out = jax.block_until_ready(tv_loss(x, tv_loss_weight=1.0))
    ref = jax.block_until_ready(tv_loss_ref(x, tv_loss_weight=1.0))
    assert jnp.allclose(out, ref, rtol=1e-5, atol=1e-5), (out, ref)

    # 2) B*C not a multiple of the tiling -> partial boundary tile,
    #    exercises the in-kernel mask (no zero-padding copy).
    x2 = jax.random.normal(jax.random.PRNGKey(1), (1, 3, 16, 16),
                           dtype=jnp.float32)
    out2 = jax.block_until_ready(tv_loss(x2, tv_loss_weight=0.5))
    ref2 = jax.block_until_ready(tv_loss_ref(x2, tv_loss_weight=0.5))
    assert jnp.allclose(out2, ref2, rtol=1e-5, atol=1e-5), (out2, ref2)

    # 3) Tiny tile budget forces a fully out-of-range tile in the last split,
    #    exercising the clamped index_map + full-tile masking path.
    x3 = jax.random.normal(jax.random.PRNGKey(2), (1, 5, 16, 16),
                           dtype=jnp.float32)
    out3 = jax.block_until_ready(
        tv_loss(x3, tv_loss_weight=1.0, target_tile_bytes=8192))
    ref3 = jax.block_until_ready(tv_loss_ref(x3, tv_loss_weight=1.0))
    assert jnp.allclose(out3, ref3, rtol=1e-5, atol=1e-5), (out3, ref3)

    print("KERNEL_OK")
</pallas_src>

<mosaic_0001>
module attributes {stable_mosaic.version = 11 : i64} {
  func.func @kernel(%arg0: i32, %arg1: i32, %arg2: memref<4x16x16xf32, #tpu.memory_space<vmem>>, %arg3: memref<1x1x1xf32, #tpu.memory_space<vmem>>, %arg4: memref<1x1x1xf32, #tpu.memory_space<vmem>>, %arg5: memref<15x16xf32, #tpu.memory_space<vmem>>, %arg6: memref<16x15xf32, #tpu.memory_space<vmem>>) attributes {dimension_semantics = [#tpu.dimension_semantics<parallel>, #tpu.dimension_semantics<arbitrary>], iteration_bounds = array<i64: 2, 1>, scalar_prefetch = 0 : i64, scratch_operands = 2 : i64, tpu.core_type = #tpu.core_type<tc>, window_params = [{transform_indices = @transform_0, window_bounds = array<i64: 4, 16, 16>}, {transform_indices = @transform_1, window_bounds = array<i64: 1, 1, 1>}, {transform_indices = @transform_2, window_bounds = array<i64: 1, 1, 1>}]} {
    %c0_i32 = arith.constant 0 : i32
    %0 = arith.cmpi eq, %arg1, %c0_i32 : i32
    %1 = arith.extui %0 : i1 to i32
    %c0_i32_0 = arith.constant 0 : i32
    %2 = arith.cmpi ne, %1, %c0_i32_0 : i32
    scf.if %2 {
      %cst_14 = arith.constant 0.000000e+00 : f32
      %23 = vector.broadcast %cst_14 : f32 to vector<15x16xf32>
      %c0_15 = arith.constant 0 : index
      %c0_16 = arith.constant 0 : index
      %24 = vector.load %arg5[%c0_15, %c0_16] : memref<15x16xf32, #tpu.memory_space<vmem>>, vector<15x16xf32>
      tpu.vector_store %arg5[%c0_15, %c0_16], %23 {strides = array<i32>} : memref<15x16xf32, #tpu.memory_space<vmem>>, vector<15x16xf32>,
      %cst_17 = arith.constant 0.000000e+00 : f32
      %25 = vector.broadcast %cst_17 : f32 to vector<16x15xf32>
      %c0_18 = arith.constant 0 : index
      %c0_19 = arith.constant 0 : index
      %26 = vector.load %arg6[%c0_18, %c0_19] : memref<16x15xf32, #tpu.memory_space<vmem>>, vector<16x15xf32>
      tpu.vector_store %arg6[%c0_18, %c0_19], %25 {strides = array<i32>} : memref<16x15xf32, #tpu.memory_space<vmem>>, vector<16x15xf32>,
    } else {
    }
    %c0 = arith.constant 0 : index
    %c0_1 = arith.constant 0 : index
    %c0_2 = arith.constant 0 : index
    %3 = vector.load %arg2[%c0, %c0_1, %c0_2] : memref<4x16x16xf32, #tpu.memory_space<vmem>>, vector<4x16x16xf32>
    %4 = vector.extract_strided_slice %3 {offsets = [0, 1, 0], sizes = [4, 15, 16], strides = [1, 1, 1]} : vector<4x16x16xf32> to vector<4x15x16xf32>
    %5 = vector.extract_strided_slice %3 {offsets = [0, 0, 0], sizes = [4, 15, 16], strides = [1, 1, 1]} : vector<4x16x16xf32> to vector<4x15x16xf32>
    %6 = arith.subf %4, %5 : vector<4x15x16xf32>
    %7 = vector.extract_strided_slice %3 {offsets = [0, 0, 1], sizes = [4, 16, 15], strides = [1, 1, 1]} : vector<4x16x16xf32> to vector<4x16x15xf32>
    %8 = vector.extract_strided_slice %3 {offsets = [0, 0, 0], sizes = [4, 16, 15], strides = [1, 1, 1]} : vector<4x16x16xf32> to vector<4x16x15xf32>
    %9 = arith.subf %7, %8 : vector<4x16x15xf32>
    %c0_3 = arith.constant 0 : index
    %c0_4 = arith.constant 0 : index
    %10 = vector.load %arg5[%c0_3, %c0_4] : memref<15x16xf32, #tpu.memory_space<vmem>>, vector<15x16xf32>
    %11 = arith.mulf %6, %6 : vector<4x15x16xf32>
    %cst = arith.constant dense<0.000000e+00> : vector<15x16xf32>
    %12 = vector.multi_reduction <add>, %11, %cst [0] : vector<4x15x16xf32> to vector<15x16xf32>
    %13 = arith.addf %10, %12 : vector<15x16xf32>
    %c0_5 = arith.constant 0 : index
    %c0_6 = arith.constant 0 : index
    %14 = vector.load %arg5[%c0_5, %c0_6] : memref<15x16xf32, #tpu.memory_space<vmem>>, vector<15x16xf32>
    tpu.vector_store %arg5[%c0_5, %c0_6], %13 {strides = array<i32>} : memref<15x16xf32, #tpu.memory_space<vmem>>, vector<15x16xf32>,
    %c0_7 = arith.constant 0 : index
    %c0_8 = arith.constant 0 : index
    %15 = vector.load %arg6[%c0_7, %c0_8] : memref<16x15xf32, #tpu.memory_space<vmem>>, vector<16x15xf32>
    %16 = arith.mulf %9, %9 : vector<4x16x15xf32>
    %cst_9 = arith.constant dense<0.000000e+00> : vector<16x15xf32>
    %17 = vector.multi_reduction <add>, %16, %cst_9 [0] : vector<4x16x15xf32> to vector<16x15xf32>
    %18 = arith.addf %15, %17 : vector<16x15xf32>
    %c0_10 = arith.constant 0 : index
    %c0_11 = arith.constant 0 : index
    %19 = vector.load %arg6[%c0_10, %c0_11] : memref<16x15xf32, #tpu.memory_space<vmem>>, vector<16x15xf32>
    tpu.vector_store %arg6[%c0_10, %c0_11], %18 {strides = array<i32>} : memref<16x15xf32, #tpu.memory_space<vmem>>, vector<16x15xf32>,
    %c0_i32_12 = arith.constant 0 : i32
    %20 = arith.cmpi eq, %arg1, %c0_i32_12 : i32
    %21 = arith.extui %20 : i1 to i32
    %c0_i32_13 = arith.constant 0 : i32
    %22 = arith.cmpi ne, %21, %c0_i32_13 : i32
    scf.if %22 {
      %cst_14 = arith.constant 0.000000e+00 : f32
      %23 = vector.broadcast %cst_14 : f32 to vector<1x1x1xf32>
      %c0_15 = arith.constant 0 : index
      %c0_16 = arith.constant 0 : index
      %24 = vector.load %arg5[%c0_15, %c0_16] : memref<15x16xf32, #tpu.memory_space<vmem>>, vector<15x16xf32>
      %25 = vector.shape_cast %24 : vector<15x16xf32> to vector<1x15x16xf32>
      %cst_17 = arith.constant dense<0.000000e+00> : vector<1xf32>
      %26 = vector.multi_reduction <add>, %25, %cst_17 [1, 2] : vector<1x15x16xf32> to vector<1xf32>
      %27 = vector.shape_cast %26 : vector<1xf32> to vector<1x1x1xf32>
      %28 = vector.extract %27[0, 0, 0] : f32 from vector<1x1x1xf32>
      %29 = vector.broadcast %28 : f32 to vector<1x1x1xf32>
      %30 = arith.addf %23, %29 : vector<1x1x1xf32>
      %c0_18 = arith.constant 0 : index
      %c0_19 = arith.constant 0 : index
      %c0_20 = arith.constant 0 : index
      %31 = vector.load %arg3[%c0_18, %c0_19, %c0_20] : memref<1x1x1xf32, #tpu.memory_space<vmem>>, vector<1x1x1xf32>
      tpu.vector_store %arg3[%c0_18, %c0_19, %c0_20], %30 {strides = array<i32>} : memref<1x1x1xf32, #tpu.memory_space<vmem>>, vector<1x1x1xf32>,
      %cst_21 = arith.constant 0.000000e+00 : f32
      %32 = vector.broadcast %cst_21 : f32 to vector<1x1x1xf32>
      %c0_22 = arith.constant 0 : index
      %c0_23 = arith.constant 0 : index
      %33 = vector.load %arg6[%c0_22, %c0_23] : memref<16x15xf32, #tpu.memory_space<vmem>>, vector<16x15xf32>
      %34 = vector.shape_cast %33 : vector<16x15xf32> to vector<1x16x15xf32>
      %cst_24 = arith.constant dense<0.000000e+00> : vector<1xf32>
      %35 = vector.multi_reduction <add>, %34, %cst_24 [1, 2] : vector<1x16x15xf32> to vector<1xf32>
      %36 = vector.shape_cast %35 : vector<1xf32> to vector<1x1x1xf32>
      %37 = vector.extract %36[0, 0, 0] : f32 from vector<1x1x1xf32>
      %38 = vector.broadcast %37 : f32 to vector<1x1x1xf32>
      %39 = arith.addf %32, %38 : vector<1x1x1xf32>
      %c0_25 = arith.constant 0 : index
      %c0_26 = arith.constant 0 : index
      %c0_27 = arith.constant 0 : index
      %40 = vector.load %arg4[%c0_25, %c0_26, %c0_27] : memref<1x1x1xf32, #tpu.memory_space<vmem>>, vector<1x1x1xf32>
      tpu.vector_store %arg4[%c0_25, %c0_26, %c0_27], %39 {strides = array<i32>} : memref<1x1x1xf32, #tpu.memory_space<vmem>>, vector<1x1x1xf32>,
    } else {
    }
    return
  }
  func.func @transform_0(%arg0: i32, %arg1: i32) -> (i32, i32, i32) {
    %c1_i32 = arith.constant 1 : i32
    %0 = arith.muli %arg0, %c1_i32 : i32
    %1 = arith.addi %0, %arg1 : i32
    %c0_i32 = arith.constant 0 : i32
    %c0_i32_0 = arith.constant 0 : i32
    %c0_i32_1 = arith.constant 0 : i32
    return %1, %c0_i32, %c0_i32_0 : i32, i32, i32
  }
  func.func @transform_1(%arg0: i32, %arg1: i32) -> (i32, i32, i32) {
    %c0_i32 = arith.constant 0 : i32
    %c0_i32_0 = arith.constant 0 : i32
    %c0_i32_1 = arith.constant 0 : i32
    return %arg0, %c0_i32, %c0_i32_0 : i32, i32, i32
  }
  func.func @transform_2(%arg0: i32, %arg1: i32) -> (i32, i32, i32) {
    %c0_i32 = arith.constant 0 : i32
    %c0_i32_0 = arith.constant 0 : i32
    %c0_i32_1 = arith.constant 0 : i32
    return %arg0, %c0_i32, %c0_i32_0 : i32, i32, i32
  }
}

</mosaic_0001>

<bundles_post_ra>
// kernel: tpu_custom_call.1
= control target key start
LH: loop header
LB: loop body
LE: loop exit
PB: predicated region body
PF: predicated region fallthrough
CT: control target
= control target key end

     0   :  { %8 = vsyncpa [#allocation5], 0  ;;  %s833_s0 = inlined_call_operand.hbm [shape: f32[8,16,16], index: 0, kind: input, shape index: {}]   ;;  %s834_s1 = inlined_call_operand.vmem [shape: f32[2,1,1], index: 1, kind: output, shape index: {0}]   ;;  %s835_s2 = inlined_call_operand.vmem [shape: f32[2,1,1], index: 2, kind: output, shape index: {1}]  }
   0x1   :  { %10 = vsyncpa [#allocation5 + $0x1], 0  ;;  %s665_s9 = smov 0   ;;  %s667_s10 = smov 0  }
   0x2   :  { %s669_s11 = smov 0   ;;  %s671_s12 = smov 0  }
   0x3   :  { %s673_s13 = smov 0   ;;  %s675_s14 = smov 0  }
   0x4 LB: > { %s485_s15 = sadd.s32 4294967295, %s643_s14   ;;  %s28_s16 = sadd.s32 1, %s639_s13  ;;  %s643_s14 = sphi %s675_s14, %s16_s14   ;;  %s639_s13 = sphi %s673_s13, %s842_s13   ;;  %s635_s12 = sphi %s671_s12, %s841_s12   ;;  %s631_s11 = sphi %s669_s11, %s840_s11   ;;  %s627_s10 = sphi %s667_s10, %s839_s10   ;;  %s623_s9 = sphi %s665_s9, %s838_s9  }
   0x5   : > { %p30_p0 = scmp.ge.s32.totalorder %s28_s16, 2  ;;  %s37_s17 = sadd.s32 1, %s631_s11 }
   0x6   : > { %p44_p1 = scmp.ne.s32.totalorder %s631_s11, %s627_s10  ;;  %p45_p2 = scmp.eq.s32.totalorder %s643_s14, 0 }
   0x7   : > { %s844_s16 = smov (%p30_p0, %s28_s16), 0  ;;  %p50_p4 = scmp.ne.s32.totalorder %s627_s10, %s623_s9 }
   0x8   : > { %p701_p3 = por %p45_p2, %p44_p1  ;;  %s34_s19 = ssub.s32 %s639_s13, %s844_s16 }
   0x9   : > { %p51_p5 = scmp.eq.s32.totalorder %s485_s15, 0  ;;  %p35_p6 = scmp.eq.s32.totalorder %s34_s19, 0 }
   0xa   : > { %p509_p8 = scmp.lt.s32.totalorder %s643_s14, 2  ;;  %s126_s22 = sand.u32 1, %s631_s11  }
   0xb   : > { %p708_p7 = por %p51_p5, %p50_p4  ;;  %s498_s23 = sshll.u32 %s639_s13, 6 }
   0xc   : > { %s714_s21 = scalar_select %p35_p6, %s631_s11, %s37_s17  }
   0xd   : > { %s489_s24 = sshll.u32 %s126_s22, 6  ;;  %s137_s27 = scalar_lea.hbm %s833_s0, %s498_s23 }
   0xe   : > { %s138_s28 = sshll.u32 %s137_s27, 4  ;;  %s130_s29 = scalar_lea.vmem [#allocation4], %s489_s24  ;;  %s139_s28 = int_to_ptr.hbm [resolvable:$true] %s138_s28 }
   0xf   : > { %s140_s30 = sshll.u32 %s130_s29, 4  ;;  %p506_p9 = pnand %p509_p8, %p701_p3  ;;  %s141_s30 = int_to_ptr.vmem [resolvable:$true] %s140_s30 }
  0x10   : > { %p493_p10 = scmp.ge.s32.totalorder %s643_s14, 1  ;;  %p148_p11 = scmp.lt.s32.totalorder %s643_s14, 3 }
  0x11   : > { %s127_s3 = scalar_lea.sflag [#allocation5], %s126_s22  ;;  %s645_s4 = smov 128  }
  0x12   : > { %s646_s5 = smov 8   ;;  %p149_p12 = pnand %p493_p10, %p148_p11 }
  0x13   : > { %508 = dma.hbm_to_vmem [thread:$0]  (!%p506_p9), %s139_s28, 1024, %s141_s30, %s127_s3, %s645_s4, %s645_s4, %s646_s5  }
  0x14   : > { %152 = sbr.rel (%p149_p12) target bundleno = 474 (0x1da), region = 24  ;;  %s154_s6 = sand.u32 (!%p149_p12), 1, %s627_s10  }
  0x15   : > { %s494_s7 = sshll.u32 (!%p149_p12), %s154_s6, 6  ;;  %s155_s8 = scalar_lea.sflag (!%p149_p12), [#allocation5], %s154_s6 }
  0x16   : > { %s158_s9 = scalar_lea.vmem (!%p149_p12), [#allocation4], %s494_s7 }
  0x19   : > { %618 = dma.done.wait (%p708_p7), %s155_s8, 1024  }
  0x1a   : > { %620 = vsyncadd (%p708_p7), %s155_s8, 4294966272  ;;  %vm193_vm0 = vcmask 130048   ;;  %v647_v0 = vmov 0.0   ;;  %v732_v1 = vld [vmem:[%s158_s9 + $0x10] sm:$0xff]  ;;  %v734_v2 = vld [vmem:[%s158_s9] sm:$0xff]  ;;  %vm216_vm1 = vcmask 1040384  }
  0x1b   : > { %194 = vst.msk [vmem:[#allocation2] sm:$0xff] %vm193_vm0, %v647_v0  ;;  %v736_v3 = vld [vmem:[%s158_s9 + $0x18] sm:$0xff]  ;;  %s648_s15 = smov 1   ;;  %v220_v4 = vrot.slane %v732_v1, 7  ;;  %v217_v5 = vrot.slane %v734_v2, 7  ;;  %v745_v7 = vld [vmem:[%s158_s9 + $0x8] sm:$0xff] }
  0x1c   : > { %249 = vrot.lane.b32.xlu1 %v732_v1, %s648_s15  ;;  %245 = vrot.lane.b32.xlu0 %v734_v2, %s648_s15  ;;  %v221_v6 = vrot.slane %v736_v3, 7  ;;  %v747_v8 = vld [vmem:[%s158_s9 + $0x38] sm:$0xff]  ;;  %vm287_vm2 = vcmask 130049   ;;  %v218_v9 = vrot.slane %v745_v7, 7  ;;  %v751_v11 = vld [vmem:[%s158_s9 + $0x30] sm:$0xff]  ;;  %vm305_vm3 = vcmask 1046528  }
  0x1d   : > { %v227_v10 = vrot.slane %v747_v8, 7  ;;  %v204_v12 = vld [vmem:[%s158_s9 + $0x20] sm:$0xff]  ;;  %v239_v13 = vsub.f32 %v732_v1, %v220_v4  ;;  %v237_v14 = vsub.f32 %v734_v2, %v217_v5  ;;  %v226_v16 = vrot.slane %v751_v11, 7  ;;  %v205_v17 = vld [vmem:[%s158_s9 + $0x28] sm:$0xff]  ;;  %s649_s17 = smov 127   ;;  %p183_p13 = scmp.lt.s32.totalorder %s635_s12, 1 }
  0x1e   : > { %v222_v15 = vsel %vm216_vm1, %v220_v4, %v221_v6  ;;  %253 = vrot.lane.b32.xlu2 %v204_v12, %s648_s15  ;;  %v219_v19 = vsel %vm216_vm1, %v217_v5, %v218_v9  ;;  %v223_v20 = vrot.slane %v204_v12, 7  ;;  %v224_v21 = vrot.slane %v205_v17, 7 }
  0x1f   : > { %v240_v18 = vsub.f32 %v736_v3, %v222_v15  ;;  %v281_v22 = vmul.f32 %v239_v13, %v239_v13  ;;  %v279_v23 = vmul.f32 %v237_v14, %v237_v14  ;;  %v238_v24 = vsub.f32 %v745_v7, %v219_v19  ;;  %s846_s12 = smov (!%p183_p13, %s635_s12), 1 }
  0x20   : > { %v228_v25 = vsel %vm216_vm1, %v226_v16, %v227_v10  ;;  %v243_v27 = vsub.f32 %v751_v11, %v226_v16  ;;  %v241_v29 = vsub.f32 %v204_v12, %v223_v20  ;;  %v225_v33 = vsel %vm216_vm1, %v223_v20, %v224_v21  ;;  %s185_s20 = scalar_lea.vmem %s834_s1, %s846_s12  ;;  %s188_s25 = scalar_lea.vmem %s835_s2, %s846_s12 }
  0x21   : > { %v282_v26 = vmul.f32 %v240_v18, %v240_v18  ;;  %v244_v28 = vsub.f32 %v747_v8, %v228_v25  ;;  %v289_v30 = vsel %vm287_vm2, %v281_v22, 0.0  ;;  %v288_v31 = vsel %vm287_vm2, %v279_v23, 0.0 }
  0x22   : > { %v280_v32 = vmul.f32 %v238_v24, %v238_v24  ;;  %v290_v34 = vadd.f32 %v289_v30, %v288_v31  ;;  %v285_v36 = vmul.f32 %v243_v27, %v243_v27  ;;  %v283_v39 = vmul.f32 %v241_v29, %v241_v29  ;;  %v277_v52 = vld [vmem:[#allocation2] sm:$0xff] }
  0x23   : > { %v297_v35 = vsel %vm193_vm0, %v282_v26, 0.0  ;;  %v286_v38 = vmul.f32 %v244_v28, %v244_v28  ;;  %v242_v40 = vsub.f32 %v205_v17, %v225_v33  ;;  %vm197_vm4 = vcmask 121856  }
  0x24   : > { %251 = vrot.lane.b32.xlu1 %v736_v3, %s648_s15  ;;  %247 = vrot.lane.b32.xlu0 %v745_v7, %s648_s15  ;;  %v296_v37 = vsel %vm193_vm0, %v280_v32, 0.0  ;;  %v293_v42 = vsel %vm287_vm2, %v285_v36, 0.0  ;;  %v291_v43 = vsel %vm287_vm2, %v283_v39, 0.0  ;;  %198 = vst.msk [vmem:[#allocation3] sm:$0xff] %vm197_vm4, %v647_v0  ;;  %vm326_vm5 = vcmask 130056  }
  0x25   : > { %v298_v41 = vadd.f32 %v297_v35, %v296_v37  ;;  %v284_v44 = vmul.f32 %v242_v40, %v242_v40  ;;  %v292_v45 = vadd.f32 %v291_v43, %v290_v34  ;;  %v301_v46 = vsel %vm193_vm0, %v286_v38, 0.0  ;;  %199 = vst.msk [vmem:[#allocation3 + $0x8] sm:$0xff] %vm197_vm4, %v647_v0 }
  0x26   : > { %255 = vrot.lane.b32.xlu2 %v205_v17, %s648_s15  ;;  %vm195_vm6 = vcmask 129024   ;;  %vm373_vm7 = vcmask 0  }
  0x27   : > { %v299_v47 = vsel %vm193_vm0, %v284_v44, 0.0  ;;  %v294_v48 = vadd.f32 %v293_v42, %v292_v45  ;;  %196 = vst.msk [vmem:[#allocation2 + $0x8] sm:$0x7f] %vm195_vm6, %v647_v0 }
  0x28   : > { %v300_v49 = vadd.f32 %v299_v47, %v298_v41 }
  0x29   : > { %v306_v50 = vrot.slane %v294_v48, 1 }
  0x2a   : > { %v302_v51 = vadd.f32 %v301_v46, %v300_v49 }
  0x2b   : > { %v316_v37 = vld [vmem:[#allocation3] sm:$0xff] }
  0x2c   : > { %259 = vrot.lane.b32.xlu1 %v747_v8, %s648_s15  ;;  %257 = vrot.lane.b32.xlu0 %v751_v11, %s648_s15  ;;  %v307_v53 = vrot.slane %v302_v51, 1  ;;  %v317_v41 = vld [vmem:[#allocation3 + $0x8] sm:$0xff] }
  0x2e   : > { %v308_v54 = vsel %vm305_vm3, %v306_v50, %v307_v53  ;;  %v278_v33 = vld [vmem:[#allocation2 + $0x8] sm:$0x7f] }
  0x2f   : > { %v311_v55 = vadd.f32 %v308_v54, %v277_v52 }
  0x31   : > { %313 = vst.msk [vmem:[#allocation2] sm:$0xff] %vm193_vm0, %v311_v55 }
  0x78   : > { %v254_v56 = vpop.permute.xlu2 %253 }
  0x79   : > { %v273_v62 = vsub.f32 %v204_v12, %v254_v56 }
  0x7b   : > { %v322_v16 = vmul.f32 %v273_v62, %v273_v62 }
  0x80   : > { %v256_v61 = vpop.permute.xlu2 %255 }
  0x81   : > { %v274_v5 = vsub.f32 %v205_v17, %v256_v61 }
  0x83   : > { %v323_v18 = vmul.f32 %v274_v5, %v274_v5 }
  0x8e   : > { %v250_v57 = vpop.permute.xlu1 %249  ;;  %v246_v58 = vpop.permute.xlu0 %245 }
  0x8f   : > { %v271_v59 = vsub.f32 %v732_v1, %v250_v57  ;;  %v269_v60 = vsub.f32 %v734_v2, %v246_v58 }
  0x91   : > { %v320_v6 = vmul.f32 %v271_v59, %v271_v59  ;;  %v318_v9 = vmul.f32 %v269_v60, %v269_v60 }
  0x93   : > { %v328_v1 = vsel %vm326_vm5, %v320_v6, 0.0  ;;  %v327_v2 = vsel %vm326_vm5, %v318_v9, 0.0 }
  0x94   : > { %v329_v17 = vadd.f32 %v328_v1, %v327_v2 }
  0x96   : > { %v252_v63 = vpop.permute.xlu1 %251  ;;  %v248_v4 = vpop.permute.xlu0 %247 }
  0x97   : > { %v272_v10 = vsub.f32 %v736_v3, %v252_v63  ;;  %v270_v13 = vsub.f32 %v745_v7, %v248_v4  ;;  %v330_v3 = vsel %vm326_vm5, %v322_v16, 0.0  ;;  %v337_v7 = vsel %vm326_vm5, %v323_v18, 0.0 }
  0x98   : > { %v331_v27 = vadd.f32 %v330_v3, %v329_v17 }
  0x99   : > { %v321_v14 = vmul.f32 %v272_v10, %v272_v10  ;;  %v319_v15 = vmul.f32 %v270_v13, %v270_v13 }
  0x9b   : > { %v335_v12 = vsel %vm326_vm5, %v321_v14, 0.0  ;;  %v334_v19 = vsel %vm326_vm5, %v319_v15, 0.0 }
  0x9c   : > { %v336_v20 = vadd.f32 %v335_v12, %v334_v19 }
  0x9e   : > { %v260_v21 = vpop.permute.xlu1 %259  ;;  %v258_v22 = vpop.permute.xlu0 %257  ;;  %v338_v28 = vadd.f32 %v337_v7, %v336_v20 }
  0x9f   : > { %v276_v23 = vsub.f32 %v747_v8, %v260_v21  ;;  %v275_v24 = vsub.f32 %v751_v11, %v258_v22  ;;  %v312_v8 = vadd.f32 %v307_v53, %v278_v33  ;;  %v357_v11 = vld [vmem:[#allocation2] sm:$0xff] }
  0xa0   : > { %v359_v35 = vsel %vm193_vm0, %v357_v11, 0.0 }
  0xa1   : > { %v325_v25 = vmul.f32 %v276_v23, %v276_v23  ;;  %v324_v26 = vmul.f32 %v275_v24, %v275_v24  ;;  %315 = vst.msk [vmem:[#allocation2 + $0x8] sm:$0x7f] %vm195_vm6, %v312_v8 }
  0xa3   : > { %v339_v29 = vsel %vm326_vm5, %v325_v25, 0.0  ;;  %v332_v30 = vsel %vm326_vm5, %v324_v26, 0.0 }
  0xa4   : > { %v340_v31 = vadd.f32 %v339_v29, %v338_v28  ;;  %v333_v32 = vadd.f32 %v332_v30, %v331_v27 }
  0xa6   : > { %345 = vrot.lane.b32.xlu0 %v340_v31, %s649_s17  ;;  %343 = vrot.lane.b32.xlu2 %v333_v32, %s649_s17 }
  0xa8   : > { %v358_v34 = vld [vmem:[#allocation2 + $0x8] sm:$0x7f] }
  0xa9   : > { %v360_v36 = vsel %vm195_vm6, %v358_v34, 0.0 }
  0xaa   : > { %v361_v38 = vadd.f32 %v360_v36, %v359_v35 }
  0xac   : > { %362 = vadd.xlane.f32.xlu1 %v361_v38 }
 0x100   : > { %v344_v39 = vpop.permute.xlu2 %343 }
 0x101   : > { %v349_v40 = vadd.f32 %v344_v39, %v316_v37 }
 0x103   : > { %352 = vst.msk [vmem:[#allocation3] sm:$0xff] %vm197_vm4, %v349_v40 }
 0x10a   : > { %v375_v0 = vld [vmem:[#allocation3] sm:$0xff] }
 0x10b   : > { %v377_v45 = vsel %vm197_vm4, %v375_v0, 0.0 }
 0x118   : > { %v346_v42 = vpop.permute.xlu0 %345 }
 0x119   : > { %v350_v43 = vadd.f32 %v346_v42, %v317_v41 }
 0x11b   : > { %353 = vst.msk [vmem:[#allocation3 + $0x8] sm:$0xff] %vm197_vm4, %v350_v43 }
 0x11f   : > { %v363_v48 = vpop.xlane.xlu1 %362 }
 0x120   : > { %v364_v49 = vrot.slane %v363_v48, 4 }
 0x122   : > { %v376_v44 = vld [vmem:[#allocation3 + $0x8] sm:$0xff]  ;;  %v365_v50 = vadd.f32 %v364_v49, %v363_v48 }
 0x123   : > { %v378_v46 = vsel %vm197_vm4, %v376_v44, 0.0 }
 0x124   : > { %v379_v47 = vadd.f32 %v378_v46, %v377_v45  ;;  %v366_v51 = vrot.slane %v365_v50, 2 }
 0x126   : > { %380 = vadd.xlane.f32.xlu2 %v379_v47  ;;  %v367_v52 = vadd.f32 %v366_v51, %v365_v50 }
 0x128   : > { %v368_v53 = vrot.slane %v367_v52, 1 }
 0x12a   : > { %v369_v54 = vadd.f32 %v368_v53, %v367_v52 }
 0x12c   : > { %499 = vpush %v369_v54 }
 0x15d   : > { %s500_s22 = spop %499 }
 0x15e   : > { %v371_v62 = vstv %s500_s22 }
 0x15f   : > { %374 = vst.msk [vmem:[%s185_s20] sm:$0x1] %vm373_vm7, %v371_v62 }
 0x199   : > { %v381_v55 = vpop.xlane.xlu2 %380 }
 0x19a   : > { %v382_v56 = vrot.slane %v381_v55, 4 }
 0x19c   : > { %v383_v57 = vadd.f32 %v382_v56, %v381_v55 }
 0x19e   : > { %v384_v58 = vrot.slane %v383_v57, 2 }
 0x1a0   : > { %v385_v59 = vadd.f32 %v384_v58, %v383_v57 }
 0x1a2   : > { %v386_v60 = vrot.slane %v385_v59, 1 }
 0x1a4   : > { %v387_v61 = vadd.f32 %v386_v60, %v385_v59 }
 0x1a6   : > { %501 = vpush %v387_v61 }
 0x1d7   : > { %s502_s26 = spop %501 }
 0x1d8   : > { %v389_v63 = vstv %s502_s26 }
 0x1d9   : > { %391 = vst.msk [vmem:[%s188_s25] sm:$0x1] %vm373_vm7, %v389_v63 }
 0x1da PF: > { %s16_s14 = sadd.s32 1, %s643_s14   ;;  %s838_s9 = smov %s627_s10 }
 0x1db   : > { %p13_p0 = scmp.ge.s32.totalorder %s16_s14, 4   ;;  %s839_s10 = smov %s631_s11 }
 0x1dc   : > { %s840_s11 = smov %s714_s21  ;;  %s841_s12 = smov %s639_s13 }
 0x1dd   : > { %s842_s13 = smov %s844_s16  ;;  %15 = sbr.rel (!%p13_p0) target bundleno = 4 (0x4), region = 84 }
 0x1e2   :  { %421 = vsyncpa [#allocation5], 1 }
 0x1e3   :  { %423 = vsyncpa [#allocation5 + $0x1], 1 }

</bundles_post_ra>
